<compile_context>
chip_gen: v7x
topology: tpu7x:2x2x1
jax: 0.10.0
libtpu: 0.0.40
codegen_flags: <defaults>
</compile_context>

<pallas_src>
import functools
import math

import jax
import jax.numpy as jnp
import numpy as np
from jax import lax
from jax.experimental import pallas as pl
from jax.experimental.pallas import tpu as pltpu


def _pe_add_kernel(x_ref, c_ref, o_ref):
    # x_ref / o_ref: (1, TR, L);  c_ref: (2, L) resident per-lane constants
    #   c_ref[0] = per-lane d(angle)/d(row), c_ref[1] = per-lane angle offset.
    tr, lanes = x_ref.shape[1], x_ref.shape[2]
    row0 = pl.program_id(1) * tr                                   # global folded-row offset
    rows = (lax.broadcasted_iota(jnp.int32, (tr, lanes), 0) + row0).astype(jnp.float32)
    angle = rows * c_ref[0:1, :] + c_ref[1:2, :]                   # VPU, broadcast over rows
    pe = jnp.sin(angle)                                            # EUP; cos == sin(. + pi/2)
    o_ref[...] = (x_ref[...].astype(jnp.float32) + pe[None]).astype(o_ref.dtype)


@functools.lru_cache(maxsize=None)
def _lane_consts(d_model: int, fold: int) -> jax.Array:
    """(2, d_model*fold) fp32 constants so that, for folded row r and lane l,
    sin(r * scale[l] + offset[l]) reproduces the PyTorch PE table entry at
    position r*fold + l//d_model, column l%d_model.  Cached across calls."""
    half_idx = np.arange(0, d_model, 2, dtype=np.float64)
    div = np.exp(half_idx * (-math.log(10000.0) / d_model))        # (D/2,)
    div_full = np.repeat(div, 2)                                   # cols 2i, 2i+1 -> div[i]
    phase = np.tile(np.array([0.0, math.pi / 2.0]), d_model // 2)  # sin / cos
    div_t = np.tile(div_full, fold)                                # (L,)
    phase_t = np.tile(phase, fold)
    sub_pos = np.repeat(np.arange(fold, dtype=np.float64), d_model)
    scale = fold * div_t
    offset = sub_pos * div_t + phase_t
    return jnp.asarray(np.stack([scale, offset]).astype(np.float32))


def _fold_factor(seq_len: int, d_model: int) -> int:
    """Smallest F making (d_model*F) a multiple of 128; used only when F | seq_len."""
    if d_model % 128 == 0:
        return 1
    f = math.lcm(d_model, 128) // d_model
    if seq_len % f == 0 and d_model * f <= 8192:
        return f
    # TODO(synk): pad S to a multiple of F here instead of falling back to masked
    # sub-128-lane stores for awkward (S, D) combinations.
    return 1


def _vmem_budget_bytes() -> int:
    try:
        phys = pltpu.get_tpu_info().vmem_capacity_bytes
    except Exception:  # interpret mode / older jax: conservative (v7x-sized) fallback
        phys = 64 << 20
    # ~3/8 of physical VMEM for the double-buffered x+out working set, capped at
    # 28 MiB (>=512-row tiles already sit on the HBM-roofline plateau).
    return int(min(phys * 3 // 8, 28 << 20))


def _choose_row_tile(num_rows: int, lanes: int, itemsize: int, batch: int) -> int:
    budget = _vmem_budget_bytes()
    # 2 arrays (x in, out) x 2 pipeline buffers x TR x lanes x itemsize
    cap = max(8, (budget // (4 * lanes * itemsize)) // 8 * 8)
    if num_rows <= cap:
        if batch == 1 and num_rows >= 16:
            # v7x megacore: guarantee >= 2 'parallel' grid steps so both TCs run.
            return max(8, (num_rows // 2) // 8 * 8)
        return num_rows                       # block dim == full array dim: always legal
    return int(min(cap, 4096))


def sinusoidal_positional_encoding(x: jax.Array) -> jax.Array:
    """x: (B, S, D). Returns x + pe[:S][None], matching the PyTorch forward."""
    B, S, D = x.shape
    assert D % 2 == 0, "d_model must be even (sin/cos interleave)"
    itemsize = jnp.dtype(x.dtype).itemsize

    F = _fold_factor(S, D)
    R, L = S // F, D * F                      # lane-dense folded view of (S, D)
    x_view = x.reshape(B, R, L)               # contiguous -> layout-only reshape
    consts = _lane_consts(D, F)               # (2, L) fp32, cached across calls

    TR = _choose_row_tile(R, L, itemsize, B)
    grid = (B, pl.cdiv(R, TR))

    out = pl.pallas_call(
        _pe_add_kernel,
        out_shape=jax.ShapeDtypeStruct((B, R, L), x.dtype),
        grid_spec=pltpu.PrefetchScalarGridSpec(
            num_scalar_prefetch=0,
            grid=grid,
            in_specs=[
                pl.BlockSpec((1, TR, L), lambda b, r: (b, r, 0)),
                pl.BlockSpec((2, L), lambda b, r: (0, 0)),   # tiny, resident constants
            ],
            out_specs=pl.BlockSpec((1, TR, L), lambda b, r: (b, r, 0)),
        ),
        compiler_params=pltpu.CompilerParams(
            dimension_semantics=("parallel", "parallel"),
            vmem_limit_bytes=_vmem_budget_bytes() + (8 << 20),
        ),
        # NOTE: input_output_aliases={0: 0} would halve peak HBM footprint when the
        # caller donates x; left off so non-donating callers don't pay a defensive copy.
    )(x_view, consts)
    return out.reshape(B, S, D)


def _pe_table_ref(seq_len: int, d_model: int) -> jax.Array:
    """Pure-JAX reference identical to the PyTorch registered buffer."""
    position = jnp.arange(seq_len, dtype=jnp.float32)[:, None]
    div_term = jnp.exp(
        jnp.arange(0, d_model, 2, dtype=jnp.float32) * (-math.log(10000.0) / d_model)
    )
    pe = jnp.zeros((seq_len, d_model), dtype=jnp.float32)
    pe = pe.at[:, 0::2].set(jnp.sin(position * div_term))
    pe = pe.at[:, 1::2].set(jnp.cos(position * div_term))
    return pe


if __name__ == "__main__":
    B, S, D = 2, 8, 32  # (batch, seq_len, d_model)
    x = jax.random.normal(jax.random.PRNGKey(0), (B, S, D), dtype=jnp.float32)

    out = jax.block_until_ready(sinusoidal_positional_encoding(x))

    ref = x + _pe_table_ref(S, D)[None]
    assert out.shape == (B, S, D)
    assert out.dtype == x.dtype
    err = float(jnp.max(jnp.abs(out - ref)))
    assert jnp.allclose(out, ref, atol=1e-4, rtol=1e-4), err
    print("KERNEL_OK")
</pallas_src>

<mosaic_0001>
module attributes {stable_mosaic.version = 11 : i64} {
  func.func @_pe_add_kernel(%arg0: i32, %arg1: i32, %arg2: memref<1x2x128xf32, #tpu.memory_space<vmem>>, %arg3: memref<2x128xf32, #tpu.memory_space<vmem>>, %arg4: memref<1x2x128xf32, #tpu.memory_space<vmem>>) attributes {dimension_semantics = [#tpu.dimension_semantics<parallel>, #tpu.dimension_semantics<parallel>], iteration_bounds = array<i64: 2, 1>, scalar_prefetch = 0 : i64, scratch_operands = 0 : i64, tpu.core_type = #tpu.core_type<tc>, window_params = [{transform_indices = @transform_0, window_bounds = array<i64: 1, 2, 128>}, {pipeline_mode = #tpu.pipeline_mode<synchronous>, transform_indices = @transform_1, window_bounds = array<i64: 2, 128>}, {transform_indices = @transform_2, window_bounds = array<i64: 1, 2, 128>}]} {
    %c2_i32 = arith.constant 2 : i32
    %0 = arith.muli %arg1, %c2_i32 : i32
    %1 = tpu.iota {dimensions = array<i32: 0>} : vector<2x128xi32>
    %2 = vector.broadcast %0 : i32 to vector<2x128xi32>
    %3 = arith.addi %1, %2 : vector<2x128xi32>
    %4 = arith.sitofp %3 : vector<2x128xi32> to vector<2x128xf32>
    %c0 = arith.constant 0 : index
    %c0_0 = arith.constant 0 : index
    %5 = vector.load %arg3[%c0, %c0_0] : memref<2x128xf32, #tpu.memory_space<vmem>>, vector<1x128xf32>
    %6 = vector.broadcast %5 : vector<1x128xf32> to vector<2x128xf32>
    %7 = arith.mulf %4, %6 : vector<2x128xf32>
    %c1 = arith.constant 1 : index
    %c0_1 = arith.constant 0 : index
    %8 = vector.load %arg3[%c1, %c0_1] : memref<2x128xf32, #tpu.memory_space<vmem>>, vector<1x128xf32>
    %9 = vector.broadcast %8 : vector<1x128xf32> to vector<2x128xf32>
    %10 = arith.addf %7, %9 : vector<2x128xf32>
    %11 = math.sin %10 : vector<2x128xf32>
    %c0_2 = arith.constant 0 : index
    %c0_3 = arith.constant 0 : index
    %c0_4 = arith.constant 0 : index
    %12 = vector.load %arg2[%c0_2, %c0_3, %c0_4] : memref<1x2x128xf32, #tpu.memory_space<vmem>>, vector<1x2x128xf32>
    %13 = vector.shape_cast %11 : vector<2x128xf32> to vector<1x2x128xf32>
    %14 = arith.addf %12, %13 : vector<1x2x128xf32>
    %c0_5 = arith.constant 0 : index
    %c0_6 = arith.constant 0 : index
    %c0_7 = arith.constant 0 : index
    %15 = vector.load %arg4[%c0_5, %c0_6, %c0_7] : memref<1x2x128xf32, #tpu.memory_space<vmem>>, vector<1x2x128xf32>
    tpu.vector_store %arg4[%c0_5, %c0_6, %c0_7], %14 {strides = array<i32>} : memref<1x2x128xf32, #tpu.memory_space<vmem>>, vector<1x2x128xf32>,
    return
  }
  func.func @transform_0(%arg0: i32, %arg1: i32) -> (i32, i32, i32) {
    %c0_i32 = arith.constant 0 : i32
    %c0_i32_0 = arith.constant 0 : i32
    return %arg0, %arg1, %c0_i32 : i32, i32, i32
  }
  func.func @transform_1(%arg0: i32, %arg1: i32) -> (i32, i32) {
    %c0_i32 = arith.constant 0 : i32
    %c0_i32_0 = arith.constant 0 : i32
    %c0_i32_1 = arith.constant 0 : i32
    return %c0_i32, %c0_i32_0 : i32, i32
  }
  func.func @transform_2(%arg0: i32, %arg1: i32) -> (i32, i32, i32) {
    %c0_i32 = arith.constant 0 : i32
    %c0_i32_0 = arith.constant 0 : i32
    return %arg0, %arg1, %c0_i32 : i32, i32, i32
  }
}

</mosaic_0001>

<bundles_post_ra>
// kernel: tpu_custom_call.1
= control target key start
LH: loop header
LB: loop body
LE: loop exit
PB: predicated region body
PF: predicated region fallthrough
CT: control target
= control target key end

     0   :  { %7 = vsyncpa [#allocation3], 0  ;;  %s834_s0 = inlined_call_operand.hbm [shape: f32[2,2,128], index: 0, kind: input, shape index: {}]   ;;  %s835_s1 = inlined_call_operand.vmem [shape: f32[2,128], index: 1, kind: input, shape index: {}]   ;;  %s836_s2 = inlined_call_operand.hbm [shape: f32[2,2,128], index: 2, kind: output, shape index: {}]  }
   0x1   :  { %9 = vsyncpa [#allocation3 + $0x1], 0 }
   0x2   :  { %10 = vsyncpa [#allocation4], 0 }
   0x3   :  { %12 = vsyncpa [#allocation4 + $0x1], 0  ;;  %s628_s9 = smov 0   ;;  %s630_s10 = smov 0  }
   0x4   :  { %s632_s11 = smov 0   ;;  %s634_s12 = smov 0  }
   0x5   :  { %s636_s13 = smov 0   ;;  %s638_s14 = smov 0  }
   0x6 LB: > { %s396_s15 = sadd.s32 4294967295, %s603_s14   ;;  %s397_s16 = sadd.s32 4294967294, %s603_s14   ;;  %s603_s14 = sphi %s638_s14, %s18_s14   ;;  %s599_s13 = sphi %s636_s13, %s852_s13   ;;  %s595_s12 = sphi %s634_s12, %s851_s12   ;;  %s591_s11 = sphi %s632_s11, %s850_s11   ;;  %s587_s10 = sphi %s630_s10, %s849_s10   ;;  %s583_s9 = sphi %s628_s9, %s848_s9  }
   0x7   : > { %s30_s17 = sadd.s32 1, %s599_s13  ;;  %s39_s18 = sadd.s32 1, %s591_s11 }
   0x8   : > { %p32_p0 = scmp.ge.s32.totalorder %s30_s17, 2  ;;  %p46_p1 = scmp.ne.s32.totalorder %s591_s11, %s587_s10 }
   0x9   : > { %p47_p2 = scmp.eq.s32.totalorder %s603_s14, 0  ;;  %p52_p3 = scmp.ne.s32.totalorder %s587_s10, %s583_s9 }
   0xa   : > { %s854_s17 = smov (%p32_p0, %s30_s17), 0  ;;  %p53_p5 = scmp.eq.s32.totalorder %s396_s15, 0 }
   0xb   : > { %p669_p4 = por %p47_p2, %p46_p1  ;;  %s34_s20 = ssub.s32 %s599_s13, %s854_s17 }
   0xc   : > { %p99_p6 = scmp.eq.s32.totalorder %s396_s15, 1  ;;  %p37_p7 = scmp.eq.s32.totalorder %s34_s20, 0 }
   0xd   : > { %p675_p8 = por %p53_p5, %p52_p3  ;;  %p105_p10 = scmp.eq.s32.totalorder %s397_s16, 1 }
   0xe   : > { %p679_p9 = por %p99_p6, %p46_p1  ;;  %p431_p13 = scmp.lt.s32.totalorder %s603_s14, 2 }
   0xf   : > { %s684_s23 = scalar_select %p37_p7, %s591_s11, %s39_s18  }
  0x10   : > { %s840_s22 = scalar_select %p679_p9, 1, 0 }
  0x11   : > { %p686_p11 = por %p105_p10, %p52_p3  ;;  %s128_s25 = sand.u32 1, %s591_s11  }
  0x12   : > { %s400_s26 = sshll.u32 %s128_s25, 1  ;;  %s401_s27 = sshll.u32 %s599_s13, 5 }
  0x13   : > { %s841_s24 = scalar_select %p686_p11, 1, 0 }
  0x14   : > { %s697_s30 = scalar_lea.hbm %s834_s0, %s401_s27  ;;  %s132_s3 = scalar_lea.vmem [#allocation2], %s400_s26 }
  0x15   : > { %s140_s4 = sshll.u32 %s132_s3, 4  ;;  %p703_p0 = pnand %p431_p13, %p669_p4  ;;  %s699_s4 = int_to_ptr.vmem [resolvable:$true] %s140_s4 }
  0x16   : > { %s129_s6 = scalar_lea.sflag [#allocation3], %s128_s25  ;;  %s491_s7 = scalar_lea.hbm %s697_s30, 32 }
  0x17   : > { %p492_p3 = scmp.ne.s32.totalorder %s697_s30, %s491_s7  ;;  %p493_p5 = pneg %p703_p0 }
  0x18   : > { %s496_s16 = scalar_lea.hbm %s834_s0, 64  ;;  %p497_p4 = scmp.lt.u32.totalorder %s697_s30, %s834_s0 }
  0x19   : > { %p494_p6 = pnand %p493_p5, %p492_p3  ;;  %p498_p10 = scmp.lt.u32.totalorder %s496_s16, %s491_s7 }
  0x1a   : > { %p500_p12 = scmp.lt.u32.totalorder %s491_s7, %s697_s30 }
  0x1b   : > { %p495_p7 = pneg %p494_p6  ;;  %p499_p13 = por %p498_p10, %p497_p4 }
  0x1d   : > { %p501_p1 = por %p500_p12, %p499_p13 }
  0x1f   : > { %p502_p2 = pnand %p501_p1, %p495_p7 }
  0x21   : > { %505 = shalt.err (!%p502_p2)
}
  0x22   : > { %s506_s20 = scalar_lea.vmem %s699_s4, 32  ;;  %s605_s25 = smov [#allocation2]  }
  0x23   : > { %p507_p3 = scmp.ne.s32.totalorder %s699_s4, %s506_s20  ;;  %s511_s26 = sshll.u32 %s605_s25, 4  ;;  %s512_s26 = int_to_ptr.vmem [resolvable:$false] %s511_s26 }
  0x24   : > { %s513_s27 = scalar_lea.vmem %s512_s26, 64  ;;  %p514_p9 = scmp.lt.s32.totalorder %s699_s4, %s512_s26 }
  0x25   : > { %p509_p6 = pnand %p507_p3, %p493_p5  ;;  %p515_p4 = scmp.lt.s32.totalorder %s513_s27, %s506_s20 }
  0x27   : > { %p510_p11 = pneg %p509_p6  ;;  %p516_p10 = por %p515_p4, %p514_p9 }
  0x29   : > { %p517_p12 = pnand %p516_p10, %p510_p11 }
  0x2b   : > { %520 = shalt.err (!%p517_p12)
}
  0x2c   : > { %426 = dma.hbm_to_vmem [thread:$0]  (!%p703_p0), %s697_s30, 32, %s699_s4, %s129_s6  }
  0x2d   : > { %p843_p1 = scmp.lt.s32.totalorder %s603_s14, 3  ;;  %p844_p2 = scmp.ge.s32.totalorder %s603_s14, 1 }
  0x2f   : > { %p146_p5 = pnand %p844_p2, %p843_p1 }
  0x30   : > { %s739_s28 = sand.u32 (!%p146_p5), 1, %s587_s10  }
  0x31   : > { %149 = sbr.rel (%p146_p5) target bundleno = 163 (0xa3), region = 28  ;;  %s403_s29 = sshll.u32 (!%p146_p5), %s739_s28, 1 }
  0x32   : > { %s152_s3 = scalar_lea.sflag (!%p146_p5), [#allocation3], %s739_s28  ;;  %s745_s5 = scalar_lea.vmem (!%p146_p5), [#allocation2], %s403_s29 }
  0x38   : > { %574 = dma.done.wait (%p675_p8), %s152_s3, 32  }
  0x39   : > { %576 = vsyncadd (%p675_p8), %s152_s3, 4294967264  ;;  %v177_v0 = vlaneseq  ;;  %v405_v3 = vld [vmem:[%s835_s1] ss:$0 sm:$0xff]  ;;  %v406_v4 = vld [vmem:[%s835_s1 + $0x1] ss:$0 sm:$0xff]  ;;  %s175_s21 = scalar_lea.vmem [#allocation5], %s403_s29 }
  0x3a   : > { %v606_v18 = vmov 683565275   ;;  %v607_v20 = vmov 2475754826   ;;  %v608_v22 = vmov 2131351028  }
  0x3b   : > { %v178_v1 = vshrl.u32 %v177_v0, 7  ;;  %v609_v24 = vmov 2102212464   ;;  %v610_v26 = vmov 920167782   ;;  %s316_s8 = sshll.u32 %s175_s21, 4  ;;  %s782_s8 = int_to_ptr.vmem [resolvable:$true] %s316_s8 }
  0x3c   : > { %v611_v33 = vmov 1326507024   ;;  %s412_s15 = sshll.u32 %s595_s12, 5  ;;  %s302_s20 = scalar_lea.sflag [#allocation4], %s739_s28 }
  0x3d   : > { %v181_v2 = vcvt.s32.f32 %v178_v1  ;;  %s787_s19 = scalar_lea.hbm %s836_s2, %s412_s15  ;;  %s521_s25 = scalar_lea.vmem %s782_s8, 32 }
  0x3e   : > { %p522_p8 = scmp.ne.s32.totalorder %s782_s8, %s521_s25  ;;  %p845_p9 = scmp.ne.s32.totalorder %s840_s22, 0 }
  0x3f   : > { %v187_v5 = vmul.f32 %v405_v3, %v181_v2  ;;  %s612_s12 = smov [#allocation5]  }
  0x40   : > { %p523_p11 = pnand %p522_p8, %p845_p9  ;;  %s525_s26 = sshll.u32 %s612_s12, 4  ;;  %s526_s26 = int_to_ptr.vmem [resolvable:$false] %s525_s26 }
  0x41   : > { %v757_v6 = vadd.f32 %v406_v4, %v187_v5  ;;  %s527_s27 = scalar_lea.vmem %s526_s26, 64  ;;  %p528_p7 = scmp.lt.s32.totalorder %s782_s8, %s526_s26 }
  0x42   : > { %p524_p0 = pneg %p523_p11  ;;  %p529_p13 = scmp.lt.s32.totalorder %s527_s27, %s521_s25 }
  0x43   : > { %v197_v7 = vand.u32 2139095040, %v757_v6  ;;  %v194_v9 = vand.u32 2147483647, %v757_v6  ;;  %vm196_vm7 = vcmp.lt.s32.totalorder %v757_v6, 0  ;;  %vm286_vm12 = vweird.f32 %v757_v6 }
  0x44   : > { %p530_p3 = por %p529_p13, %p528_p7 }
  0x45   : > { %v198_v8 = vshrl.u32 %v197_v7, 23  ;;  %v201_v12 = vand.u32 8388607, %v194_v9  ;;  %vm195_vm8 = vcmp.le.f32.partialorder %v194_v9, 0.7853982 }
  0x46   : > { %p531_p6 = pnand %p530_p3, %p524_p0 }
  0x47   : > { %v407_v10 = vadd.s32 4294967169, %v198_v8  ;;  %v202_v15 = vor.u32 8388608, %v201_v12 }
  0x49   : > { %v204_v11 = vadd.s32 1, %v407_v10  ;;  %v242_v35 = vshll.u32 %v202_v15, 8 }
  0x4b   : > { %vm205_vm0 = vcmp.gt.s32.totalorder %v204_v11, 0 }
  0x4c   : > { %v206_v13 = vsel %vm205_vm0, %v204_v11, 0 }
  0x4d   : > { %v208_v14 = vand.u32 31, %v206_v13  ;;  %v207_v16 = vshrl.u32 %v206_v13, 5 }
  0x4f   : > { %v209_v17 = vsub.s32 32, %v208_v14  ;;  %v211_v19 = vshll.u32 %v606_v18, %v208_v14  ;;  %v214_v21 = vshll.u32 %v607_v20, %v208_v14  ;;  %v217_v23 = vshll.u32 %v608_v22, %v208_v14 }
  0x50   : > { %v220_v25 = vshll.u32 %v609_v24, %v208_v14  ;;  %v223_v27 = vshll.u32 %v610_v26, %v208_v14  ;;  %vm226_vm1 = vcmp.lt.s32.totalorder %v207_v16, 1  ;;  %vm229_vm2 = vcmp.lt.s32.totalorder %v207_v16, 4 }
  0x51   : > { %v210_v28 = vshrl.u32 %v606_v18, %v209_v17  ;;  %v212_v29 = vshrl.u32 %v607_v20, %v209_v17  ;;  %v215_v30 = vshrl.u32 %v608_v22, %v209_v17  ;;  %v218_v31 = vshrl.u32 %v609_v24, %v209_v17 }
  0x52   : > { %v221_v32 = vshrl.u32 %v610_v26, %v209_v17  ;;  %v224_v34 = vshrl.u32 %v611_v33, %v209_v17  ;;  %vm227_vm3 = vcmp.lt.s32.totalorder %v207_v16, 2  ;;  %vm228_vm4 = vcmp.lt.s32.totalorder %v207_v16, 3  ;;  %v298_v33 = vld [vmem:[%s745_s5] sm:$0x3] }
  0x53   : > { %v213_v36 = vor.u32 %v212_v29, %v211_v19  ;;  %v216_v37 = vor.u32 %v215_v30, %v214_v21  ;;  %v219_v38 = vor.u32 %v218_v31, %v217_v23 }
  0x54   : > { %v222_v39 = vor.u32 %v221_v32, %v220_v25  ;;  %v225_v40 = vor.u32 %v224_v34, %v223_v27 }
  0x55   : > { %v230_v41 = vsel %vm226_vm1, %v210_v28, %v213_v36  ;;  %v231_v42 = vsel %vm229_vm2, %v219_v38, 2102212464  ;;  %v234_v43 = vsel %vm226_vm1, %v213_v36, %v216_v37  ;;  %v238_v44 = vsel %vm226_vm1, %v216_v37, %v219_v38 }
  0x56   : > { %v232_v45 = vsel %vm228_vm4, %v216_v37, %v231_v42  ;;  %v235_v46 = vsel %vm229_vm2, %v222_v39, 920167782  ;;  %v239_v47 = vsel %vm229_vm2, %v225_v40, 1326507024 }
  0x57   : > { %v236_v48 = vsel %vm228_vm4, %v219_v38, %v235_v46  ;;  %v240_v49 = vsel %vm228_vm4, %v222_v39, %v239_v47  ;;  %v233_v50 = vsel %vm227_vm3, %v230_v41, %v232_v45 }
  0x58   : > { %v237_v51 = vsel %vm227_vm3, %v234_v43, %v236_v48  ;;  %v241_v52 = vsel %vm227_vm3, %v238_v44, %v240_v49  ;;  %v249_v57 = vmul.u32 %v242_v35, %v233_v50 }
  0x59   : > { %v763_v53 = vmul.u32.u64.low %v242_v35, %v241_v52  ;;  %v764_v54 = vmul.u32.u64.high %v242_v35, %v241_v52, %v763_v53  ;;  %v766_v55 = vmul.u32.u64.low %v242_v35, %v237_v51  ;;  %v767_v56 = vmul.u32.u64.high %v242_v35, %v237_v51, %v766_v55 }
  0x5b   : > { %vm251_vm5 = vc.u32 %v764_v54, %v766_v55  ;;  %v252_v58 = vadd.s32 1, %v767_v56  ;;  %v250_v5 = vadd.s32 %v766_v55, %v764_v54 }
  0x5d   : > { %v253_v59 = vsel %vm251_vm5, %v252_v58, %v767_v56 }
  0x5e   : > { %v254_v60 = vadd.s32 %v253_v59, %v249_v57 }
  0x60   : > { %v255_v61 = vadd.s32 536870912, %v254_v60 }
  0x62   : > { %v256_v62 = vshrl.u32 %v255_v61, 30 }
  0x64   : > { %v257_v63 = vshll.u32 %v256_v62, 30  ;;  %v280_v19 = vsub.s32 4, %v256_v62 }
  0x66   : > { %v258_v0 = vsub.s32 %v254_v60, %v257_v63  ;;  %v281_v22 = vsel %vm196_vm7, %v280_v19, %v256_v62 }
  0x67   : > { %v283_v25 = vsel %vm195_vm8, 0, %v281_v22 }
  0x68   : > { %v260_v1 = vsub.s32 0, %v258_v0  ;;  %v287_v26 = vadd.s32 3, %v283_v25 }
  0x6a   : > { %v408_v2 = vmin.u32 %v260_v1, %v258_v0  ;;  %v288_v27 = vand.u32 3, %v287_v26 }
  0x6c   : > { %v262_v3 = vclz %v408_v2  ;;  %vm293_vm9 = vcmp.eq.s32.totalorder %v288_v27, 2  ;;  %vm290_vm10 = vcmp.eq.s32.totalorder %v288_v27, 0  ;;  %vm289_vm11 = vcmp.lt.s32.totalorder %v288_v27, 2 }
  0x6e   : > { %v409_v4 = vadd.s32 4294967294, %v262_v3 }
  0x70   : > { %vm410_vm6 = vcmp.lt.s32.totalorder %v409_v4, 0 }
  0x71   : > { %v265_v7 = vsel %vm410_vm6, 0, %v409_v4 }
  0x72   : > { %v266_v8 = vsub.s32 32, %v265_v7  ;;  %v267_v10 = vshll.u32 %v258_v0, %v265_v7  ;;  %v270_v11 = vsub.s32 4294967266, %v265_v7 }
  0x74   : > { %v268_v12 = vshrl.u32 %v250_v5, %v266_v8  ;;  %v271_v13 = vadd.s32 127, %v270_v11 }
  0x76   : > { %v269_v14 = vor.u32 %v268_v12, %v267_v10  ;;  %v272_v15 = vshll.u32 %v271_v13, 23 }
  0x78   : > { %v273_v16 = vor.u32 4788187, %v272_v15  ;;  %v276_v17 = vcvt.s32.f32 %v269_v14 }
  0x7a   : > { %v274_v18 = vand.u32 2147483647, %v273_v16 }
  0x7c   : > { %v277_v20 = vmul.f32 %v276_v17, %v274_v18 }
  0x7e   : > { %v278_v21 = vxor.u32 2147483648, %v277_v20 }
  0x80   : > { %v279_v23 = vsel %vm196_vm7, %v278_v21, %v277_v20 }
  0x81   : > { %v282_v24 = vsel %vm195_vm8, %v757_v6, %v279_v23 }
  0x82   : > { %487 = vcosq.f32 %v282_v24 }
  0x83   : > { %489 = vsinq.f32 %v282_v24 }
  0x8c   : > { %v488_v28 = vpop.eup %487 }
  0x8d   : > { %v490_v29 = vpop.eup %489  ;;  %v294_v30 = vxor.u32 2147483648, %v488_v28 }
  0x8e   : > { %v291_v9 = vxor.u32 2147483648, %v490_v29 }
  0x8f   : > { %v295_v31 = vsel %vm293_vm9, %v294_v30, %v490_v29 }
  0x90   : > { %v292_v32 = vsel %vm290_vm10, %v488_v28, %v291_v9 }
  0x91   : > { %v296_v34 = vsel %vm289_vm11, %v292_v32, %v295_v31 }
  0x92   : > { %v297_v35 = vsel %vm286_vm12, nan, %v296_v34 }
  0x93   : > { %v299_v36 = vadd.f32 %v298_v33, %v297_v35 }
  0x95   : > { %300 = vst [vmem:[%s175_s21] sm:$0x3] %v299_v36 }
  0x96   : > { %534 = shalt.err (!%p531_p6)
}
  0x97   : > { %s535_s28 = scalar_lea.hbm %s787_s19, 32  ;;  %s539_s5 = scalar_lea.hbm %s836_s2, 64 }
  0x98   : > { %p536_p4 = scmp.ne.s32.totalorder %s787_s19, %s535_s28  ;;  %p540_p1 = scmp.lt.u32.totalorder %s787_s19, %s836_s2 }
  0x99   : > { %p541_p2 = scmp.lt.u32.totalorder %s539_s5, %s535_s28  ;;  %p543_p8 = scmp.lt.u32.totalorder %s535_s28, %s787_s19 }
  0x9a   : > { %p537_p10 = pnand %p536_p4, %p845_p9 }
  0x9b   : > { %p542_p5 = por %p541_p2, %p540_p1 }
  0x9c   : > { %p538_p12 = pneg %p537_p10 }
  0x9d   : > { %p544_p11 = por %p543_p8, %p542_p5 }
  0x9f   : > { %p545_p0 = pnand %p544_p11, %p538_p12 }
  0xa1   : > { %548 = shalt.err (!%p545_p0)
}
  0xa2   : > { %421 = dma.vmem_to_hbm [thread:$0]  (%p845_p9), %s782_s8, 32, %s787_s19, %s302_s20  }
  0xa3 PF: > { %s328_s6 = sand.u32 1, %s583_s9   ;;  %p846_p7 = scmp.ne.s32.totalorder %s841_s24, 0 }
  0xa4   : > { %p847_p13 = scmp.ge.s32.totalorder %s603_s14, 2  ;;  %s329_s7 = scalar_lea.sflag [#allocation4], %s328_s6 }
  0xa6   : > { %p428_p3 = pnand %p847_p13, %p846_p7 }
  0xa8   : > { %578 = dma.done.wait (!%p428_p3), %s329_s7, 32  }
  0xa9   : > { %580 = vsyncadd (!%p428_p3), %s329_s7, 4294967264  ;;  %s18_s14 = sadd.s32 1, %s603_s14   ;;  %s848_s9 = smov %s587_s10 }
  0xaa   : > { %p15_p6 = scmp.ge.s32.totalorder %s18_s14, 4   ;;  %s849_s10 = smov %s591_s11 }
  0xab   : > { %s850_s11 = smov %s684_s23  ;;  %s851_s12 = smov %s599_s13 }
  0xac   : > { %s852_s13 = smov %s854_s17  ;;  %17 = sbr.rel (!%p15_p6) target bundleno = 6 (0x6), region = 73 }
  0xb3   :  { %334 = vsyncpa [#allocation3], 1 }
  0xb4   :  { %336 = vsyncpa [#allocation3 + $0x1], 1 }
  0xb5   :  { %337 = vsyncpa [#allocation4], 1 }
  0xb6   :  { %339 = vsyncpa [#allocation4 + $0x1], 1 }

</bundles_post_ra>
